<compile_context>
chip_gen: v5e
topology: v5e:2x2
jax: 0.10.0
libtpu: 0.0.40
codegen_flags: <defaults>
</compile_context>

<pallas_src>
import jax
import jax.numpy as jnp
from jax.experimental import pallas as pl
from jax.experimental.pallas import tpu as pltpu


def _ufo_attention_kernel(xq_ref, xk_ref, xv_ref,
                          wq_ref, wk_ref, wv_ref,
                          wo_ref, bo_ref, g2_ref, p_ref,
                          o_ref):
    f32 = jnp.float32
    xq = xq_ref[0]          # (Lq, E)
    xk = xk_ref[0]          # (Lk, E)
    xv = xv_ref[0]          # (Lk, E)

    # Per-head q/k/v projections as packed block-diagonal matmuls (MXU).
    q = jnp.dot(xq, wq_ref[...], preferred_element_type=f32)   # (Lq, E)
    k = jnp.dot(xk, wk_ref[...], preferred_element_type=f32)   # (Lk, E)
    v = jnp.dot(xv, wv_ref[...], preferred_element_type=f32)   # (Lk, E)

    p = p_ref[...]          # (E, E) block-diagonal ones (head grouping mask)
    g2 = g2_ref[...]        # (1, E) gamma[h]^2 repeated over each head's cols

    # kv[h] = k[h]^T @ v[h], packed as the block-diagonal of k^T @ v.
    kv = jax.lax.dot_general(k, v, (((0,), (0,)), ((), ())),
                             preferred_element_type=f32)        # (E, E)
    kv = kv * p

    # XNorm(kv): L4-normalize each block row (off-block entries are zero, so
    # the full-row norm equals the per-head block-row norm).
    kv2 = kv * kv
    kv_norm = jnp.sqrt(jnp.sqrt(jnp.sum(kv2 * kv2, axis=-1, keepdims=True)))
    kv_n = kv / kv_norm                                         # (E, E)

    # XNorm(q): per-head L4 norm, broadcast across each head's columns via P.
    q2 = q * q
    q_norm = jnp.sqrt(jnp.sqrt(jnp.dot(q2 * q2, p,
                                       preferred_element_type=f32)))
    # gamma multiplies both q and kv in the reference; both folded into g2.
    q_n = q * g2 / q_norm                                       # (Lq, E)

    out = jnp.dot(q_n, kv_n, preferred_element_type=f32)        # (Lq, E)
    out = jnp.dot(out, wo_ref[...], preferred_element_type=f32) + bo_ref[...]
    o_ref[0] = out.astype(o_ref.dtype)


def ufo_attention_pallas(queries, keys, values, params, heads):
    """queries: (N, Lq, E); keys/values: (N, Lk, E).  Returns (N, Lq, E)."""
    wq, wk, wv = params["wq"], params["wk"], params["wv"]
    wo, bo, gamma = params["wo"], params["bo"], params["gamma"]

    N, Lq, E = queries.shape
    Lk = keys.shape[1]
    assert values.shape[1] == Lk, "key_len must equal value_len"
    assert E % heads == 0
    d = E // heads

    f32 = jnp.float32
    eye_h = jnp.eye(heads, dtype=f32)
    # Packed block-diagonal projection matrices: x_packed @ kron(I_H, W^T)
    # applies the per-head Linear(d, d) on the head-packed (.., E) layout.
    wq_bd = jnp.kron(eye_h, wq.T.astype(f32))                  # (E, E)
    wk_bd = jnp.kron(eye_h, wk.T.astype(f32))                  # (E, E)
    wv_bd = jnp.kron(eye_h, wv.T.astype(f32))                  # (E, E)
    p_mask = jnp.kron(eye_h, jnp.ones((d, d), dtype=f32))      # (E, E)
    g = gamma.reshape(heads).astype(f32)
    g2 = jnp.repeat(g * g, d).reshape(1, E)                    # (1, E)
    wo_t = wo.T.astype(f32)                                    # (E, E)
    bo_row = bo.reshape(1, E).astype(f32)                      # (1, E)

    out = pl.pallas_call(
        _ufo_attention_kernel,
        out_shape=jax.ShapeDtypeStruct((N, Lq, E), queries.dtype),
        grid=(N,),
        in_specs=[
            pl.BlockSpec((1, Lq, E), lambda b: (b, 0, 0)),     # queries
            pl.BlockSpec((1, Lk, E), lambda b: (b, 0, 0)),     # keys
            pl.BlockSpec((1, Lk, E), lambda b: (b, 0, 0)),     # values
            pl.BlockSpec((E, E), lambda b: (0, 0)),            # wq_bd
            pl.BlockSpec((E, E), lambda b: (0, 0)),            # wk_bd
            pl.BlockSpec((E, E), lambda b: (0, 0)),            # wv_bd
            pl.BlockSpec((E, E), lambda b: (0, 0)),            # wo^T
            pl.BlockSpec((1, E), lambda b: (0, 0)),            # bo
            pl.BlockSpec((1, E), lambda b: (0, 0)),            # gamma^2
            pl.BlockSpec((E, E), lambda b: (0, 0)),            # head mask P
        ],
        out_specs=pl.BlockSpec((1, Lq, E), lambda b: (b, 0, 0)),
        compiler_params=pltpu.CompilerParams(
            dimension_semantics=("parallel",),
        ),
    )(queries.astype(f32), keys.astype(f32), values.astype(f32),
      wq_bd, wk_bd, wv_bd, wo_t, bo_row, g2, p_mask)
    return out


def ufo_attention_reference(queries, keys, values, params, heads):
    """Pure-JAX mirror of the PyTorch forward (for correctness checking)."""
    wq, wk, wv = params["wq"], params["wk"], params["wv"]
    wo, bo, gamma = params["wo"], params["bo"], params["gamma"]
    N, Lq, E = queries.shape
    Lk = keys.shape[1]
    d = E // heads
    hp = jax.lax.Precision.HIGHEST

    def xnorm(x, g):
        n = jnp.power(jnp.sum(x ** 4, axis=-1, keepdims=True), 0.25)
        return x * g / n

    q4 = queries.reshape(N, Lq, heads, d)
    k4 = keys.reshape(N, Lk, heads, d)
    v4 = values.reshape(N, Lk, heads, d)
    q = jnp.einsum("nlhi,ji->nhlj", q4, wq, precision=hp)       # (N,H,Lq,d)
    k = jnp.einsum("nlhi,ji->nhjl", k4, wk, precision=hp)       # (N,H,d,Lk)
    v = jnp.einsum("nlhi,ji->nhlj", v4, wv, precision=hp)       # (N,H,Lk,d)
    kv = jnp.einsum("nhdl,nhle->nhde", k, v, precision=hp)      # (N,H,d,d)
    g = gamma.reshape(1, heads, 1, 1)
    kv_n = xnorm(kv, g)
    q_n = xnorm(q, g)
    out = jnp.einsum("nhld,nhde->nhle", q_n, kv_n, precision=hp)
    out = out.transpose(0, 2, 1, 3).reshape(N, Lq, E)
    return jnp.einsum("nle,fe->nlf", out, wo, precision=hp) + bo.reshape(1, 1, E)


if __name__ == "__main__":
    embed_size, heads = 32, 4
    N, Lq, Lk = 2, 8, 8
    d = embed_size // heads

    root = jax.random.PRNGKey(0)
    ks = jax.random.split(root, 9)
    q_in = jax.random.normal(ks[0], (N, Lq, embed_size), jnp.float32)
    k_in = jax.random.normal(ks[1], (N, Lk, embed_size), jnp.float32)
    v_in = jax.random.normal(ks[2], (N, Lk, embed_size), jnp.float32)

    params = dict(
        wq=jax.random.normal(ks[3], (d, d), jnp.float32) / (d ** 0.5),
        wk=jax.random.normal(ks[4], (d, d), jnp.float32) / (d ** 0.5),
        wv=jax.random.normal(ks[5], (d, d), jnp.float32) / (d ** 0.5),
        wo=jax.random.normal(ks[6], (embed_size, embed_size), jnp.float32)
        / (embed_size ** 0.5),
        bo=jax.random.normal(ks[7], (embed_size,), jnp.float32) * 0.1,
        gamma=jax.random.normal(ks[8], (1, heads, 1, 1), jnp.float32),
    )

    out = ufo_attention_pallas(q_in, k_in, v_in, params, heads)
    out = jax.block_until_ready(out)

    ref = ufo_attention_reference(q_in, k_in, v_in, params, heads)
    assert out.shape == (N, Lq, embed_size) and out.dtype == q_in.dtype
    assert bool(jnp.all(jnp.isfinite(out)))
    assert jnp.allclose(out, ref, atol=2e-3, rtol=2e-3), (
        f"max abs err = {float(jnp.max(jnp.abs(out - ref)))}")

    print("KERNEL_OK")
</pallas_src>

<mosaic_0001>
module attributes {stable_mosaic.version = 11 : i64} {
  func.func @_ufo_attention_kernel(%arg0: i32, %arg1: memref<1x8x32xf32, #tpu.memory_space<vmem>>, %arg2: memref<1x8x32xf32, #tpu.memory_space<vmem>>, %arg3: memref<1x8x32xf32, #tpu.memory_space<vmem>>, %arg4: memref<32x32xf32, #tpu.memory_space<vmem>>, %arg5: memref<32x32xf32, #tpu.memory_space<vmem>>, %arg6: memref<32x32xf32, #tpu.memory_space<vmem>>, %arg7: memref<32x32xf32, #tpu.memory_space<vmem>>, %arg8: memref<1x32xf32, #tpu.memory_space<vmem>>, %arg9: memref<1x32xf32, #tpu.memory_space<vmem>>, %arg10: memref<32x32xf32, #tpu.memory_space<vmem>>, %arg11: memref<1x8x32xf32, #tpu.memory_space<vmem>>) attributes {dimension_semantics = [#tpu.dimension_semantics<parallel>], iteration_bounds = array<i64: 2>, scalar_prefetch = 0 : i64, scratch_operands = 0 : i64, tpu.core_type = #tpu.core_type<tc>, window_params = [{transform_indices = @transform_0, window_bounds = array<i64: 1, 8, 32>}, {transform_indices = @transform_1, window_bounds = array<i64: 1, 8, 32>}, {transform_indices = @transform_2, window_bounds = array<i64: 1, 8, 32>}, {pipeline_mode = #tpu.pipeline_mode<synchronous>, transform_indices = @transform_3, window_bounds = array<i64: 32, 32>}, {pipeline_mode = #tpu.pipeline_mode<synchronous>, transform_indices = @transform_4, window_bounds = array<i64: 32, 32>}, {pipeline_mode = #tpu.pipeline_mode<synchronous>, transform_indices = @transform_5, window_bounds = array<i64: 32, 32>}, {pipeline_mode = #tpu.pipeline_mode<synchronous>, transform_indices = @transform_6, window_bounds = array<i64: 32, 32>}, {pipeline_mode = #tpu.pipeline_mode<synchronous>, transform_indices = @transform_7, window_bounds = array<i64: 1, 32>}, {pipeline_mode = #tpu.pipeline_mode<synchronous>, transform_indices = @transform_8, window_bounds = array<i64: 1, 32>}, {pipeline_mode = #tpu.pipeline_mode<synchronous>, transform_indices = @transform_9, window_bounds = array<i64: 32, 32>}, {transform_indices = @transform_10, window_bounds = array<i64: 1, 8, 32>}]} {
    %c0 = arith.constant 0 : index
    %c0_0 = arith.constant 0 : index
    %c0_1 = arith.constant 0 : index
    %0 = vector.load %arg1[%c0, %c0_0, %c0_1] : memref<1x8x32xf32, #tpu.memory_space<vmem>>, vector<1x8x32xf32>
    %1 = vector.shape_cast %0 : vector<1x8x32xf32> to vector<8x32xf32>
    %c0_2 = arith.constant 0 : index
    %c0_3 = arith.constant 0 : index
    %c0_4 = arith.constant 0 : index
    %2 = vector.load %arg2[%c0_2, %c0_3, %c0_4] : memref<1x8x32xf32, #tpu.memory_space<vmem>>, vector<1x8x32xf32>
    %3 = vector.shape_cast %2 : vector<1x8x32xf32> to vector<8x32xf32>
    %c0_5 = arith.constant 0 : index
    %c0_6 = arith.constant 0 : index
    %c0_7 = arith.constant 0 : index
    %4 = vector.load %arg3[%c0_5, %c0_6, %c0_7] : memref<1x8x32xf32, #tpu.memory_space<vmem>>, vector<1x8x32xf32>
    %5 = vector.shape_cast %4 : vector<1x8x32xf32> to vector<8x32xf32>
    %c0_8 = arith.constant 0 : index
    %c0_9 = arith.constant 0 : index
    %6 = vector.load %arg4[%c0_8, %c0_9] : memref<32x32xf32, #tpu.memory_space<vmem>>, vector<32x32xf32>
    %cst = arith.constant dense<0.000000e+00> : vector<8x32xf32>
    %7 = tpu.matmul %1, %6, %cst {dimension_numbers = #tpu.dot_dimension_numbers<[1], [0], [0], [1], [0, 0, 1, 1], [], []>} : vector<8x32xf32>, vector<32x32xf32>, vector<8x32xf32> -> vector<8x32xf32>
    %c0_10 = arith.constant 0 : index
    %c0_11 = arith.constant 0 : index
    %8 = vector.load %arg5[%c0_10, %c0_11] : memref<32x32xf32, #tpu.memory_space<vmem>>, vector<32x32xf32>
    %cst_12 = arith.constant dense<0.000000e+00> : vector<8x32xf32>
    %9 = tpu.matmul %3, %8, %cst_12 {dimension_numbers = #tpu.dot_dimension_numbers<[1], [0], [0], [1], [0, 0, 1, 1], [], []>} : vector<8x32xf32>, vector<32x32xf32>, vector<8x32xf32> -> vector<8x32xf32>
    %c0_13 = arith.constant 0 : index
    %c0_14 = arith.constant 0 : index
    %10 = vector.load %arg6[%c0_13, %c0_14] : memref<32x32xf32, #tpu.memory_space<vmem>>, vector<32x32xf32>
    %cst_15 = arith.constant dense<0.000000e+00> : vector<8x32xf32>
    %11 = tpu.matmul %5, %10, %cst_15 {dimension_numbers = #tpu.dot_dimension_numbers<[1], [0], [0], [1], [0, 0, 1, 1], [], []>} : vector<8x32xf32>, vector<32x32xf32>, vector<8x32xf32> -> vector<8x32xf32>
    %c0_16 = arith.constant 0 : index
    %c0_17 = arith.constant 0 : index
    %12 = vector.load %arg10[%c0_16, %c0_17] : memref<32x32xf32, #tpu.memory_space<vmem>>, vector<32x32xf32>
    %c0_18 = arith.constant 0 : index
    %c0_19 = arith.constant 0 : index
    %13 = vector.load %arg9[%c0_18, %c0_19] : memref<1x32xf32, #tpu.memory_space<vmem>>, vector<1x32xf32>
    %cst_20 = arith.constant dense<0.000000e+00> : vector<32x32xf32>
    %14 = tpu.matmul %9, %11, %cst_20 {dimension_numbers = #tpu.dot_dimension_numbers<[0], [0], [1], [1], [0, 1, 1, 1], [], []>} : vector<8x32xf32>, vector<8x32xf32>, vector<32x32xf32> -> vector<32x32xf32>
    %15 = arith.mulf %14, %12 : vector<32x32xf32>
    %16 = arith.mulf %15, %15 : vector<32x32xf32>
    %17 = arith.mulf %16, %16 : vector<32x32xf32>
    %cst_21 = arith.constant dense<0.000000e+00> : vector<32xf32>
    %18 = vector.multi_reduction <add>, %17, %cst_21 [1] : vector<32x32xf32> to vector<32xf32>
    %19 = vector.shape_cast %18 : vector<32xf32> to vector<32x1xf32>
    %20 = math.sqrt %19 : vector<32x1xf32>
    %21 = math.sqrt %20 : vector<32x1xf32>
    %22 = vector.broadcast %21 : vector<32x1xf32> to vector<32x32xf32>
    %23 = arith.divf %15, %22 : vector<32x32xf32>
    %24 = arith.mulf %7, %7 : vector<8x32xf32>
    %25 = arith.mulf %24, %24 : vector<8x32xf32>
    %cst_22 = arith.constant dense<0.000000e+00> : vector<8x32xf32>
    %26 = tpu.matmul %25, %12, %cst_22 {dimension_numbers = #tpu.dot_dimension_numbers<[1], [0], [0], [1], [0, 0, 1, 1], [], []>} : vector<8x32xf32>, vector<32x32xf32>, vector<8x32xf32> -> vector<8x32xf32>
    %27 = math.sqrt %26 : vector<8x32xf32>
    %28 = math.sqrt %27 : vector<8x32xf32>
    %29 = vector.broadcast %13 : vector<1x32xf32> to vector<8x32xf32>
    %30 = arith.mulf %7, %29 : vector<8x32xf32>
    %31 = arith.divf %30, %28 : vector<8x32xf32>
    %cst_23 = arith.constant dense<0.000000e+00> : vector<8x32xf32>
    %32 = tpu.matmul %31, %23, %cst_23 {dimension_numbers = #tpu.dot_dimension_numbers<[1], [0], [0], [1], [0, 0, 1, 1], [], []>} : vector<8x32xf32>, vector<32x32xf32>, vector<8x32xf32> -> vector<8x32xf32>
    %c0_24 = arith.constant 0 : index
    %c0_25 = arith.constant 0 : index
    %33 = vector.load %arg7[%c0_24, %c0_25] : memref<32x32xf32, #tpu.memory_space<vmem>>, vector<32x32xf32>
    %cst_26 = arith.constant dense<0.000000e+00> : vector<8x32xf32>
    %34 = tpu.matmul %32, %33, %cst_26 {dimension_numbers = #tpu.dot_dimension_numbers<[1], [0], [0], [1], [0, 0, 1, 1], [], []>} : vector<8x32xf32>, vector<32x32xf32>, vector<8x32xf32> -> vector<8x32xf32>
    %c0_27 = arith.constant 0 : index
    %c0_28 = arith.constant 0 : index
    %35 = vector.load %arg8[%c0_27, %c0_28] : memref<1x32xf32, #tpu.memory_space<vmem>>, vector<1x32xf32>
    %36 = vector.broadcast %35 : vector<1x32xf32> to vector<8x32xf32>
    %37 = arith.addf %34, %36 : vector<8x32xf32>
    %c0_29 = arith.constant 0 : index
    %c0_30 = arith.constant 0 : index
    %c0_31 = arith.constant 0 : index
    %38 = vector.load %arg11[%c0_29, %c0_30, %c0_31] : memref<1x8x32xf32, #tpu.memory_space<vmem>>, vector<1x8x32xf32>
    %39 = vector.shape_cast %38 : vector<1x8x32xf32> to vector<8x32xf32>
    %40 = vector.shape_cast %37 : vector<8x32xf32> to vector<1x8x32xf32>
    tpu.vector_store %arg11[%c0_29, %c0_30, %c0_31], %40 {strides = array<i32>} : memref<1x8x32xf32, #tpu.memory_space<vmem>>, vector<1x8x32xf32>,
    return
  }
  func.func @transform_0(%arg0: i32) -> (i32, i32, i32) {
    %c0_i32 = arith.constant 0 : i32
    %c0_i32_0 = arith.constant 0 : i32
    %c0_i32_1 = arith.constant 0 : i32
    return %arg0, %c0_i32, %c0_i32_0 : i32, i32, i32
  }
  func.func @transform_1(%arg0: i32) -> (i32, i32, i32) {
    %c0_i32 = arith.constant 0 : i32
    %c0_i32_0 = arith.constant 0 : i32
    %c0_i32_1 = arith.constant 0 : i32
    return %arg0, %c0_i32, %c0_i32_0 : i32, i32, i32
  }
  func.func @transform_2(%arg0: i32) -> (i32, i32, i32) {
    %c0_i32 = arith.constant 0 : i32
    %c0_i32_0 = arith.constant 0 : i32
    %c0_i32_1 = arith.constant 0 : i32
    return %arg0, %c0_i32, %c0_i32_0 : i32, i32, i32
  }
  func.func @transform_3(%arg0: i32) -> (i32, i32) {
    %c0_i32 = arith.constant 0 : i32
    %c0_i32_0 = arith.constant 0 : i32
    %c0_i32_1 = arith.constant 0 : i32
    return %c0_i32, %c0_i32_0 : i32, i32
  }
  func.func @transform_4(%arg0: i32) -> (i32, i32) {
    %c0_i32 = arith.constant 0 : i32
    %c0_i32_0 = arith.constant 0 : i32
    %c0_i32_1 = arith.constant 0 : i32
    return %c0_i32, %c0_i32_0 : i32, i32
  }
  func.func @transform_5(%arg0: i32) -> (i32, i32) {
    %c0_i32 = arith.constant 0 : i32
    %c0_i32_0 = arith.constant 0 : i32
    %c0_i32_1 = arith.constant 0 : i32
    return %c0_i32, %c0_i32_0 : i32, i32
  }
  func.func @transform_6(%arg0: i32) -> (i32, i32) {
    %c0_i32 = arith.constant 0 : i32
    %c0_i32_0 = arith.constant 0 : i32
    %c0_i32_1 = arith.constant 0 : i32
    return %c0_i32, %c0_i32_0 : i32, i32
  }
  func.func @transform_7(%arg0: i32) -> (i32, i32) {
    %c0_i32 = arith.constant 0 : i32
    %c0_i32_0 = arith.constant 0 : i32
    %c0_i32_1 = arith.constant 0 : i32
    return %c0_i32, %c0_i32_0 : i32, i32
  }
  func.func @transform_8(%arg0: i32) -> (i32, i32) {
    %c0_i32 = arith.constant 0 : i32
    %c0_i32_0 = arith.constant 0 : i32
    %c0_i32_1 = arith.constant 0 : i32
    return %c0_i32, %c0_i32_0 : i32, i32
  }
  func.func @transform_9(%arg0: i32) -> (i32, i32) {
    %c0_i32 = arith.constant 0 : i32
    %c0_i32_0 = arith.constant 0 : i32
    %c0_i32_1 = arith.constant 0 : i32
    return %c0_i32, %c0_i32_0 : i32, i32
  }
  func.func @transform_10(%arg0: i32) -> (i32, i32, i32) {
    %c0_i32 = arith.constant 0 : i32
    %c0_i32_0 = arith.constant 0 : i32
    %c0_i32_1 = arith.constant 0 : i32
    return %arg0, %c0_i32, %c0_i32_0 : i32, i32, i32
  }
}

</mosaic_0001>

<bundles_post_ra>
// kernel: tpu_custom_call.1
= control target key start
LH: loop header
LB: loop body
LE: loop exit
PB: predicated region body
PF: predicated region fallthrough
CT: control target
= control target key end

     0   :  { %s2133_s0 = inlined_call_operand.hbm [shape: f32[2,8,32], index: 0, kind: input, shape index: {}]   ;;  %s2134_s1 = inlined_call_operand.hbm [shape: f32[2,8,32], index: 1, kind: input, shape index: {}]   ;;  %s2135_s2 = inlined_call_operand.hbm [shape: f32[2,8,32], index: 2, kind: input, shape index: {}]   ;;  %s2136_s3 = inlined_call_operand.hbm [shape: f32[32,32], index: 3, kind: input, shape index: {}]   ;;  %s2137_s4 = inlined_call_operand.hbm [shape: f32[32,32], index: 4, kind: input, shape index: {}]   ;;  %s2138_s5 = inlined_call_operand.hbm [shape: f32[32,32], index: 5, kind: input, shape index: {}]   ;;  %s2139_s6 = inlined_call_operand.hbm [shape: f32[32,32], index: 6, kind: input, shape index: {}]   ;;  %s2140_s7 = inlined_call_operand.vmem [shape: f32[1,32], index: 7, kind: input, shape index: {}]   ;;  %s2141_s8 = inlined_call_operand.vmem [shape: f32[1,32], index: 8, kind: input, shape index: {}]   ;;  %s2142_s9 = inlined_call_operand.hbm [shape: f32[32,32], index: 9, kind: input, shape index: {}]   ;;  %s2143_s10 = inlined_call_operand.hbm [shape: f32[2,8,32], index: 10, kind: output, shape index: {}]  }
   0x1   :  { %2155 = sst [smem:[#allocation28_spill]] %s2134_s1 }
   0x2   :  { %2156 = sst [smem:[#allocation29_spill]] %s2136_s3 }
   0x3   :  { %2157 = sst [smem:[#allocation30_spill]] %s2137_s4 }
   0x4   :  { %2158 = sst [smem:[#allocation31_spill]] %s2138_s5 }
   0x5   :  { %2159 = sst [smem:[#allocation32_spill]] %s2140_s7 }
   0x6   :  { %15 = vsyncpa [#allocation3], 0 }
   0x7   :  { %17 = vsyncpa [#allocation3 + $0x1], 0 }
   0x8   :  { %18 = vsyncpa [#allocation6], 0 }
   0x9   :  { %20 = vsyncpa [#allocation6 + $0x1], 0 }
   0xa   :  { %21 = vsyncpa [#allocation9], 0 }
   0xb   :  { %22 = vsyncpa [#allocation12], 0 }
   0xc   :  { %23 = vsyncpa [#allocation15], 0 }
   0xd   :  { %24 = vsyncpa [#allocation4], 0 }
   0xe   :  { %26 = vsyncpa [#allocation4 + $0x1], 0  ;;  %s1746_s13 = smov 0   ;;  %s1748_s14 = smov 0  }
   0xf   :  { %s1750_s15 = smov 0   ;;  %s1752_s16 = smov 0  }
  0x10 LB: > { %2160 = sst [smem:[#allocation23_spill]] %s1670_s13  ;;  %s1770_s20 = sadd.s32 4294967295, %s1682_s16   ;;  %s1682_s16 = sphi %s1752_s16, %s2195_s16   ;;  %s1678_s15 = sphi %s1750_s15, %s2199_s15   ;;  %s1674_s14 = sphi %s1748_s14, %s2198_s14   ;;  %s1670_s13 = sphi %s1746_s13, %s2197_s13  }
  0x11   : > { %2161 = sst [smem:[#allocation24_spill]] %s1682_s16  ;;  %p1180_p0 = scmp.ge.s32.totalorder %s1682_s16, 1 }
  0x12   : > { %s2162_s3 = sld [smem:[#allocation29_spill]]  ;;  %p2153_p1 = scmp.eq.s32.totalorder %s1770_s20, 0 }
  0x13   : > { %p288_p2 = scmp.lt.s32.totalorder %s1682_s16, 3  ;;  %s1684_s22 = smov [#allocation8]  }
  0x14   : > { %s301_s23 = sshll.u32 %s1684_s22, 4  ;;  %s2164_s5 = sld [smem:[#allocation31_spill]]  ;;  %s302_s23 = int_to_ptr.vmem [resolvable:$true] %s301_s23 }
  0x15   : > { %p1775_p3 = pnand %p1180_p0, %p288_p2  ;;  %s1685_s28 = smov [#allocation11]  }
  0x16   : > { %s329_s29 = sshll.u32 %s1685_s28, 4  ;;  %s2144_s30 = smov 128   ;;  %s330_s29 = int_to_ptr.vmem [resolvable:$true] %s329_s29 }
  0x17   : > { %p1246_p4 = pneg %p1775_p3  ;;  %s2146_s11 = smov 8  }
  0x18   : > { %s299_s19 = sshll.u32 %s2162_s3, 4  ;;  %s1179_s12 = sadd.s32 4294967294, %s1682_s16   ;;  %s300_s19 = int_to_ptr.hbm [resolvable:$true] %s299_s19 }
  0x19   : > { %p1787_p6 = pnand %p1246_p4, %p2153_p1  ;;  %s1803_s17 = sadd.s32 1, %s1682_s16  }
  0x1a   : > { %s327_s26 = sshll.u32 %s2164_s5, 4  ;;  %2166 = sst [smem:[#allocation25_spill]] %s1803_s17  ;;  %s328_s26 = int_to_ptr.hbm [resolvable:$true] %s327_s26 }
  0x1b   : > { %1249 = dma.hbm_to_vmem [thread:$0]  (!%p1787_p6), %s300_s19, 512, %s302_s23, [#allocation9], %s2144_s30, %s2144_s30, %s2146_s11  }
  0x1c   : > { %1255 = dma.hbm_to_vmem [thread:$0]  (!%p1787_p6), %s328_s26, 512, %s330_s29, [#allocation12], %s2144_s30, %s2144_s30, %s2146_s11  }
  0x1d   : > { %s36_s18 = ssub.s32 %s1682_s16, %s1803_s17  ;;  %s39_s22 = sadd.s32 1, %s1678_s15 }
  0x1e   : > { %p37_p7 = scmp.eq.s32.totalorder %s36_s18, 0  ;;  %p46_p8 = scmp.ne.s32.totalorder %s1678_s15, %s1674_s14 }
  0x1f   : > { %p47_p9 = scmp.eq.s32.totalorder %s1682_s16, 0  ;;  %p52_p10 = scmp.ne.s32.totalorder %s1674_s14, %s1670_s13 }
  0x20   : > { %s1814_s19 = scalar_select %p37_p7, %s1678_s15, %s39_s22  }
  0x21   : > { %p48_p11 = por %p47_p9, %p46_p8  ;;  %p1818_p12 = por %p2153_p1, %p52_p10 }
  0x22   : > { %2167 = sst [smem:[#allocation26_spill]] %s1814_s19  ;;  %p275_p13 = scmp.eq.s32.totalorder %s1770_s20, 1 }
  0x23   : > { %p281_p0 = scmp.eq.s32.totalorder %s1179_s12, 1  ;;  %p1281_p2 = scmp.lt.s32.totalorder %s1682_s16, 2 }
  0x24   : > { %s2148_s24 = sand.u32 1, %s1678_s15   ;;  %p1825_p4 = por %p275_p13, %p46_p8 }
  0x25   : > { %p1829_p5 = por %p281_p0, %p52_p10  ;;  %s1835_s28 = sshll.u32 %s2148_s24, 3 }
  0x26   : > { %s1838_s29 = sshll.u32 %s1682_s16, 3  ;;  %p1840_p7 = pnand %p1281_p2, %p48_p11 }
  0x27   : > { %s2170_s26 = scalar_select %p1829_p5, 1, 0 }
  0x28   : > { %s396_s12 = sand.u32 1, %s1682_s16   ;;  %s2173_s1 = sld [smem:[#allocation28_spill]] }
  0x29   : > { %2171 = sst [smem:[#allocation27_spill]] %s2170_s26  ;;  %s400_s5 = scalar_lea.vmem [#allocation5], %s1835_s28 }
  0x2a   : > { %s408_s19 = sshll.u32 %s400_s5, 4  ;;  %s1850_s24 = scalar_lea.sflag [#allocation6], %s396_s12  ;;  %s409_s19 = int_to_ptr.vmem [resolvable:$true] %s408_s19 }
  0x2b   : > { %p1424_p9 = pneg %p1840_p7 }
  0x2e   : > { %s404_s11 = scalar_lea.hbm %s2173_s1, %s1838_s29 }
  0x2f   : > { %s406_s3 = sshll.u32 %s404_s11, 4  ;;  %s1427_s11 = scalar_lea.hbm %s2173_s1, 16  ;;  %s407_s3 = int_to_ptr.hbm [resolvable:$true] %s406_s3 }
  0x30   : > { %s1420_s17 = sshra.s32 %s407_s3, 4  ;;  %s1421_s17 = int_to_ptr.hbm [resolvable:$true] %s1420_s17 }
  0x31   : > { %s1422_s26 = scalar_lea.hbm %s1421_s17, 8  ;;  %p1428_p13 = scmp.lt.s32.totalorder %s1421_s17, %s2173_s1 }
  0x32   : > { %p1423_p8 = scmp.ne.s32.totalorder %s1421_s17, %s1422_s26  ;;  %p1429_p0 = scmp.lt.s32.totalorder %s1427_s11, %s1422_s26 }
  0x34   : > { %p1425_p10 = pnand %p1424_p9, %p1423_p8  ;;  %p1430_p2 = por %p1429_p0, %p1428_p13 }
  0x36   : > { %p1426_p11 = pneg %p1425_p10 }
  0x38   : > { %p1431_p1 = pnand %p1430_p2, %p1426_p11 }
  0x3a   : > { %1434 = shalt.err (!%p1431_p1)
}
  0x3b   : > { %1268 = dma.hbm_to_vmem [thread:$0]  (!%p1840_p7), %s407_s3, 128, %s409_s19, %s1850_s24  }
  0x3c   : > { %s2174_s4 = sld [smem:[#allocation30_spill]]  ;;  %s1688_s16 = smov [#allocation10]  }
  0x3d   : > { %s315_s30 = sshll.u32 %s1688_s16, 4  ;;  %s341_s11 = sshll.u32 %s2139_s6, 4  ;;  %s316_s30 = int_to_ptr.vmem [resolvable:$true] %s315_s30  ;;  %s342_s11 = int_to_ptr.hbm [resolvable:$true] %s341_s11 }
  0x3e   : > { %s2175_s22 = smov 8   ;;  %s2176_s5 = smov 128  }
  0x3f   : > { %s1689_s3 = smov [#allocation13]   ;;  %s361_s1 = sshll.u32 %s2142_s9, 4  ;;  %s362_s1 = int_to_ptr.hbm [resolvable:$true] %s361_s1 }
  0x40   : > { %s343_s13 = sshll.u32 %s1689_s3, 4  ;;  %s1690_s16 = smov [#allocation14]   ;;  %s344_s13 = int_to_ptr.vmem [resolvable:$true] %s343_s13 }
  0x41   : > { %1258 = dma.hbm_to_vmem [thread:$0]  (!%p1787_p6), %s342_s11, 512, %s344_s13, [#allocation12], %s2176_s5, %s2176_s5, %s2175_s22  }
  0x42   : > { %s313_s7 = sshll.u32 %s2174_s4, 4  ;;  %s363_s17 = sshll.u32 %s1690_s16, 4  ;;  %s314_s7 = int_to_ptr.hbm [resolvable:$true] %s313_s7  ;;  %s364_s17 = int_to_ptr.vmem [resolvable:$true] %s363_s17 }
  0x43   : > { %1252 = dma.hbm_to_vmem [thread:$0]  (!%p1787_p6), %s314_s7, 512, %s316_s30, [#allocation9], %s2176_s5, %s2176_s5, %s2175_s22  }
  0x44   : > { %s385_s26 = scalar_lea.hbm %s2133_s0, %s1838_s29  ;;  %s381_s19 = scalar_lea.vmem [#allocation2], %s1835_s28 }
  0x45   : > { %1261 = dma.hbm_to_vmem [thread:$0]  (!%p1787_p6), %s362_s1, 512, %s364_s17, [#allocation15], %s2176_s5, %s2176_s5, %s2175_s22  }
  0x46   : > { %s387_s3 = sshll.u32 %s385_s26, 4  ;;  %s389_s12 = sshll.u32 %s381_s19, 4  ;;  %s388_s3 = int_to_ptr.hbm [resolvable:$true] %s387_s3  ;;  %s390_s12 = int_to_ptr.vmem [resolvable:$true] %s389_s12 }
  0x47   : > { %s2177_s4 = sand.u32 1, %s1678_s15   ;;  %s1540_s13 = sshra.s32 %s388_s3, 4  ;;  %s1541_s13 = int_to_ptr.hbm [resolvable:$true] %s1540_s13 }
  0x48   : > { %s378_s11 = scalar_lea.sflag [#allocation3], %s2177_s4  ;;  %s1542_s16 = scalar_lea.hbm %s1541_s13, 8 }
  0x49   : > { %p1543_p1 = scmp.ne.s32.totalorder %s1541_s13, %s1542_s16  ;;  %s1547_s30 = scalar_lea.hbm %s2133_s0, 16 }
  0x4a   : > { %p1548_p6 = scmp.lt.s32.totalorder %s1541_s13, %s2133_s0  ;;  %p1549_p11 = scmp.lt.s32.totalorder %s1547_s30, %s1542_s16 }
  0x4b   : > { %p1545_p8 = pnand %p1543_p1, %p1424_p9 }
  0x4c   : > { %p1550_p13 = por %p1549_p11, %p1548_p6 }
  0x4d   : > { %p1546_p10 = pneg %p1545_p8 }
  0x4f   : > { %p1551_p0 = pnand %p1550_p13, %p1546_p10 }
  0x51   : > { %1554 = shalt.err (!%p1551_p0)
}
  0x52   : > { %1265 = dma.hbm_to_vmem [thread:$0]  (!%p1840_p7), %s388_s3, 128, %s390_s12, %s378_s11  }
  0x53   : > { %s423_s17 = scalar_lea.hbm %s2135_s2, %s1838_s29  ;;  %s419_s19 = scalar_lea.vmem [#allocation7], %s1835_s28 }
  0x54   : > { %s425_s26 = sshll.u32 %s423_s17, 4  ;;  %s427_s27 = sshll.u32 %s419_s19, 4  ;;  %s426_s26 = int_to_ptr.hbm [resolvable:$true] %s425_s26  ;;  %s428_s27 = int_to_ptr.vmem [resolvable:$true] %s427_s27 }
  0x55   : > { %s1570_s13 = sshra.s32 %s426_s26, 4  ;;  %s1577_s3 = scalar_lea.hbm %s2135_s2, 16  ;;  %s1571_s13 = int_to_ptr.hbm [resolvable:$true] %s1570_s13 }
  0x56   : > { %s1572_s16 = scalar_lea.hbm %s1571_s13, 8  ;;  %p1578_p10 = scmp.lt.s32.totalorder %s1571_s13, %s2135_s2 }
  0x57   : > { %p1573_p2 = scmp.ne.s32.totalorder %s1571_s13, %s1572_s16  ;;  %p1579_p6 = scmp.lt.s32.totalorder %s1577_s3, %s1572_s16 }
  0x59   : > { %p1575_p1 = pnand %p1573_p2, %p1424_p9  ;;  %p1580_p11 = por %p1579_p6, %p1578_p10 }
  0x5b   : > { %p1576_p8 = pneg %p1575_p1 }
  0x5d   : > { %p1581_p13 = pnand %p1580_p11, %p1576_p8 }
  0x5f   : > { %1584 = shalt.err (!%p1581_p13)
}
  0x60   : > { %1271 = dma.hbm_to_vmem [thread:$0]  (!%p1840_p7), %s426_s26, 128, %s428_s27, %s1850_s24  }
  0x61   : > { %436 = sbr.rel (%p1775_p3) target bundleno = 1026 (0x402), region = 60  ;;  %s1928_s28 = sand.u32 (!%p1775_p3), 1, %s1674_s14  }
  0x62   : > { %s1931_s29 = sshll.u32 (!%p1775_p3), %s1928_s28, 3  ;;  %s439_s1 = scalar_lea.sflag (!%p1775_p3), [#allocation3], %s1928_s28 }
  0x63   : > { %s442_s22 = scalar_lea.vmem (!%p1775_p3), [#allocation2], %s1931_s29 }
  0x66   : > { %1645 = dma.done.wait (%p1818_p12), %s439_s1, 128  }
  0x67   : > { %1647 = vsyncadd (%p1818_p12), %s439_s1, 4294967168  ;;  %s448_s21 = sand.u32 1, %s1770_s20   ;;  %s452_s18 = scalar_lea.vmem [#allocation5], %s1931_s29 }
  0x68   : > { %s449_s24 = scalar_lea.sflag [#allocation6], %s448_s21 }
  0x69   : > { %1649 = dma.done.wait (%p1818_p12), %s449_s24, 256  }
  0x6a   : > { %1651 = vsyncadd (%p1818_p12), %s449_s24, 4294967040  ;;  %s462_s4 = scalar_lea.vmem [#allocation7], %s1931_s29  ;;  %p2178_p3 = scmp.eq.s32.totalorder %s1770_s20, 0 }
  0x6c   : > { %1653 = dma.done.wait (%p2178_p3), [#allocation9], 1024   ;;  %p2179_p7 = pmov %p2178_p3 }
  0x6d   : > { %p2180_p9 = pmov %p2178_p3 }
  0x6e   : > { %1655 = vsyncadd (%p2179_p7), [#allocation9], 4294966272 }
  0x6f   : > { %1657 = dma.done.wait (%p2180_p9), [#allocation12], 1024   ;;  %p2181_p0 = pmov %p2178_p3 }
  0x71   : > { %1659 = vsyncadd (%p2181_p0), [#allocation12], 4294966272  ;;  %p2182_p2 = pmov %p2181_p0 }
  0x72   : > { %p2183_p1 = pmov %p2181_p0 }
  0x73   : > { %1661 = dma.done.wait (%p2182_p2), [#allocation15], 512  }
  0x74   : > { %1663 = vsyncadd (%p2183_p1), [#allocation15], 4294966784  ;;  %v569_v0 = vld [vmem:[#allocation10 + $0x18] sm:$0xff]  ;;  %v568_v1 = vld [vmem:[#allocation10 + $0x10] sm:$0xff]  ;;  %vm542_vm0 = vcmask 261120   ;;  %vm657_vm1 = vcmask 64512  }
  0x75   : > { %585 = vmatpush.msra.mxu1 %v569_v0  ;;  %v567_v2 = vld [vmem:[#allocation10 + $0x8] sm:$0xff]  ;;  %v566_v3 = vld [vmem:[#allocation10] sm:$0xff]  ;;  %v596_v5 = vld [vmem:[#allocation11 + $0x18] sm:$0xff]  ;;  %s1214_s17 = sshll.u32 %s1770_s20, 3  ;;  %s2190_s7 = sld [smem:[#allocation32_spill]] }
  0x76   : > { %v536_v4 = vld [vmem:[%s452_s18] sm:$0xff]  ;;  %v595_v6 = vld [vmem:[#allocation11 + $0x10] sm:$0xff]  ;;  %612 = vmatpush.msra.mxu2 %v596_v5  ;;  %v541_v7 = vld [vmem:[#allocation8 + $0x18] sm:$0xff]  ;;  %s1013_s27 = scalar_lea.hbm %s2143_s10, %s1214_s17  ;;  %s534_s30 = scalar_lea.vmem [#allocation16], %s1931_s29 }
  0x77   : > { %586 = vmatpush.msra.mxu1 %v568_v1  ;;  %v594_v8 = vld [vmem:[#allocation11 + $0x8] sm:$0xff]  ;;  %558 = vmatpush.msra.mxu0 %v541_v7  ;;  %v540_v9 = vld [vmem:[#allocation8 + $0x10] sm:$0xff]  ;;  %v593_v11 = vld [vmem:[#allocation11] sm:$0xff]  ;;  %s1015_s3 = sshll.u32 %s534_s30, 4  ;;  %s1017_s12 = sshll.u32 %s1013_s27, 4  ;;  %s1016_s3 = int_to_ptr.vmem [resolvable:$true] %s1015_s3  ;;  %s1018_s12 = int_to_ptr.hbm [resolvable:$true] %s1017_s12 }
  0x78   : > { %613 = vmatpush.msra.mxu2 %v595_v6  ;;  %v539_v10 = vld [vmem:[#allocation8 + $0x8] sm:$0xff]  ;;  %v537_v12 = vld [vmem:[%s462_s4] sm:$0xff]  ;;  %v538_v13 = vld [vmem:[#allocation8] sm:$0xff]  ;;  %s1003_s11 = scalar_lea.sflag [#allocation4], %s1928_s28  ;;  %s1614_s20 = sshra.s32 %s1018_s12, 4  ;;  %s1615_s20 = int_to_ptr.hbm [resolvable:$true] %s1614_s20 }
  0x79   : > { %587 = vmatpush.msra.mxu1 %v567_v2  ;;  %559 = vmatpush.msra.mxu0 %v540_v9  ;;  %v535_v14 = vld [vmem:[%s442_s22] sm:$0xff]  ;;  %v621_v19 = vld [vmem:[#allocation14 + $0x8] sm:$0xff]  ;;  %v620_v20 = vld [vmem:[#allocation14] sm:$0xff]  ;;  %s1616_s1 = scalar_lea.hbm %s1615_s20, 8  ;;  %s1620_s29 = scalar_lea.hbm %s2143_s10, 16 }
  0x7a   : > { %614 = vmatpush.msra.mxu2 %v594_v8  ;;  %v623_v17 = vld [vmem:[#allocation14 + $0x18] sm:$0xff]  ;;  %v622_v18 = vld [vmem:[#allocation14 + $0x10] sm:$0xff]  ;;  %p1617_p12 = scmp.ne.s32.totalorder %s1615_s20, %s1616_s1  ;;  %p1621_p6 = scmp.lt.s32.totalorder %s1615_s20, %s2143_s10 }
  0x7b   : > { %588 = vmatpush.msra.mxu1 %v566_v3  ;;  %560 = vmatpush.msra.mxu0 %v539_v10  ;;  %p1622_p11 = scmp.lt.s32.totalorder %s1620_s29, %s1616_s1 }
  0x7c   : > { %1204 = vmatmul.msk.f32.vlgmr.msra.gmra.mxu1 %vm542_vm0, %v536_v4  ;;  %615 = vmatpush.msra.mxu2 %v593_v11  ;;  %p1618_p8 = pnand %p1617_p12, %p1825_p4 }
  0x7d   : > { %1205 = vmatmul.msk.f32.vlgmr.msra.gmra.mxu2 %vm542_vm0, %v537_v12  ;;  %561 = vmatpush.msra.mxu0 %v538_v13  ;;  %p1623_p13 = por %p1622_p11, %p1621_p6 }
  0x7e   : > { %1203 = vmatmul.msk.f32.vlgmr.msra.gmra.mxu0 %vm542_vm0, %v535_v14  ;;  %p1619_p10 = pneg %p1618_p8 }
  0x80   : > { %p1624_p3 = pnand %p1623_p13, %p1619_p10 }
  0xf9   : > { %v590_v15 = vpop.f32.mrf.mxu1 }
  0xfa   : > { %625 = vxpose.xlu0.b32.start.end [1/1] (short) (narrow) %v590_v15, 32 }
  0xfb   : > { %v1963_v21 = vpop.f32.mrf.mxu0 }
  0xfc   : > { %v879_v23 = vmul.f32 %v1963_v21, %v1963_v21 }
  0xfe   : > { %v880_v24 = vmul.f32 %v879_v23, %v879_v23 }
 0x100   : > { %v617_v16 = vpop.f32.mrf.mxu2 }
 0x101   : > { %685 = vmatpush.msrb.mxu0 %v617_v16  ;;  %1217 = vmatpush.msra.mxu3 %v617_v16 }
 0x103   : > { %896 = vmatpush.msra.mxu0 %v623_v17 }
 0x105   : > { %897 = vmatpush.msra.mxu0 %v622_v18 }
 0x107   : > { %898 = vmatpush.msra.mxu0 %v621_v19 }
 0x109   : > { %899 = vmatpush.msra.mxu0 %v620_v20 }
 0x19e   : > { %v641_v22 = vpop.trf.xlu0 }
 0x19f   : > { %1206 = vmatmul.msk.f32.vlgmr.msrb.gmra.mxu0 %vm657_vm1, %v641_v22 }
 0x1a6   : > { %v642_v25 = vpop.trf.xlu0 }
 0x1a7   : > { %1207 = vmatmul.msk.f32.vlgmr.msra.gmra.mxu3 %vm657_vm1, %v642_v25  ;;  %1210 = vmatmul.msk.f32.vlgmr.msra.gmra.mxu0 %vm542_vm0, %v880_v24 }
 0x1ae   : > { %v643_v26 = vpop.trf.xlu0 }
 0x1af   : > { %1208 = vmatmul.msk.f32.gmra.mxu3 %vm657_vm1, %v643_v26 }
 0x1b6   : > { %v644_v27 = vpop.trf.xlu0 }
 0x1b7   : > { %1209 = vmatmul.msk.f32.gmra.mxu3 %vm657_vm1, %v644_v27 }
 0x21c   : > { %v687_v28 = vpop.f32.mrf.mxu0 }
 0x21d   : > { %v1968_v29 = vmul.f32 %v687_v28, %v620_v20 }
 0x21f   : > { %v703_v30 = vmul.f32 %v1968_v29, %v1968_v29 }
 0x221   : > { %v707_v31 = vmul.f32 %v703_v30, %v703_v30 }
 0x223   : > { %v711_v32 = vsel %vm542_vm0, %v707_v31, 0.0 }
 0x224   : > { %712 = vadd.xlane.f32.xlu2 %v711_v32  ;;  %v901_v48 = vpop.f32.mrf.mxu0 }
 0x225   : > { %1330 = vrsqrt.f32 %v901_v48  ;;  %vm911_vm2 = vcmp.eq.f32.partialorder %v901_v48, inf  ;;  %v914_v60 = vand.u32 2147483648, %v901_v48  ;;  %vm913_vm3 = vcmp.eq.f32.partialorder %v901_v48, 0.0 }
 0x22a   : > { %v690_v33 = vpop.f32.mrf.mxu3 }
 0x22b   : > { %v1975_v36 = vmul.f32 %v690_v33, %v621_v19  ;;  %v1331_v49 = vpop.eup %1330 }
 0x22c   : > { %v905_v50 = vmul.f32 %v1331_v49, %v901_v48 }
 0x22d   : > { %v704_v39 = vmul.f32 %v1975_v36, %v1975_v36 }
 0x22e   : > { %v906_v51 = vmul.f32 %v1331_v49, %v905_v50 }
 0x22f   : > { %v708_v44 = vmul.f32 %v704_v39, %v704_v39 }
 0x230   : > { %v907_v52 = vmul.f32 0.5, %v906_v51 }
 0x231   : > { %v714_v46 = vsel %vm542_vm0, %v708_v44, 0.0 }
 0x232   : > { %v693_v34 = vpop.f32.mrf.mxu3  ;;  %v908_v54 = vsub.f32 1.5, %v907_v52 }
 0x233   : > { %v1973_v35 = vmul.f32 %v693_v34, %v622_v18 }
 0x234   : > { %v909_v55 = vmul.f32 %v1331_v49, %v908_v54 }
 0x235   : > { %v705_v37 = vmul.f32 %v1973_v35, %v1973_v35 }
 0x236   : > { %v910_v58 = vmul.f32 %v909_v55, %v901_v48 }
 0x237   : > { %v709_v38 = vmul.f32 %v705_v37, %v705_v37 }
 0x238   : > { %v912_v62 = vsel %vm911_vm2, %v901_v48, %v910_v58 }
 0x239   : > { %v717_v40 = vsel %vm542_vm0, %v709_v38, 0.0  ;;  %v1988_v0 = vsel %vm913_vm3, %v914_v60, %v912_v62 }
 0x23a   : > { %718 = vadd.xlane.f32.xlu1 %v717_v40  ;;  %v696_v41 = vpop.f32.mrf.mxu3  ;;  %vm923_vm8 = vcmp.eq.f32.partialorder %v1988_v0, inf  ;;  %vm925_vm13 = vcmp.eq.f32.partialorder %v1988_v0, 0.0 }
 0x23b   : > { %v1982_v42 = vmul.f32 %v696_v41, %v623_v17 }
 0x23d   : > { %v706_v43 = vmul.f32 %v1982_v42, %v1982_v42 }
 0x23f   : > { %v710_v45 = vmul.f32 %v706_v43, %v706_v43 }
 0x241   : > { %v720_v47 = vsel %vm542_vm0, %v710_v45, 0.0 }
 0x242   : > { %715 = vadd.xlane.f32.xlu1 %v714_v46  ;;  %721 = vadd.xlane.f32.xlu0 %v720_v47 }
 0x297   : > { %v713_v53 = vpop.xlane.xlu2 %712 }
 0x298   : > { %1332 = vrsqrt.f32 %v713_v53  ;;  %vm730_vm4 = vcmp.eq.f32.partialorder %v713_v53, inf  ;;  %v733_v4 = vand.u32 2147483648, %v713_v53  ;;  %vm732_vm5 = vcmp.eq.f32.partialorder %v713_v53, 0.0 }
 0x299   : > { %1334 = vrsqrt.f32 %v1988_v0 }
 0x29e   : > { %v1333_v56 = vpop.eup %1332 }
 0x29f   : > { %v724_v57 = vmul.f32 %v1333_v56, %v713_v53  ;;  %v1335_v7 = vpop.eup %1334 }
 0x2a0   : > { %v917_v8 = vmul.f32 %v1335_v7, %v1988_v0 }
 0x2a1   : > { %v725_v59 = vmul.f32 %v1333_v56, %v724_v57 }
 0x2a2   : > { %v918_v14 = vmul.f32 %v1335_v7, %v917_v8 }
 0x2a3   : > { %v726_v61 = vmul.f32 0.5, %v725_v59  ;;  %v926_v59 = vand.u32 2147483648, %v1988_v0 }
 0x2a4   : > { %v919_v19 = vmul.f32 0.5, %v918_v14 }
 0x2a5   : > { %v727_v63 = vsub.f32 1.5, %v726_v61 }
 0x2a6   : > { %v920_v30 = vsub.f32 1.5, %v919_v19 }
 0x2a7   : > { %v728_v1 = vmul.f32 %v1333_v56, %v727_v63 }
 0x2a8   : > { %v921_v41 = vmul.f32 %v1335_v7, %v920_v30 }
 0x2a9   : > { %v729_v2 = vmul.f32 %v728_v1, %v713_v53 }
 0x2aa   : > { %v922_v48 = vmul.f32 %v921_v41, %v1988_v0 }
 0x2ab   : > { %v731_v3 = vsel %vm730_vm4, %v713_v53, %v729_v2 }
 0x2ac   : > { %v1991_v6 = vsel %vm732_vm5, %v733_v4, %v731_v3  ;;  %v924_v61 = vsel %vm923_vm8, %v1988_v0, %v922_v48 }
 0x2ad   : > { %v719_v5 = vpop.xlane.xlu1 %718  ;;  %v2007_v1 = vsel %vm925_vm13, %v926_v59, %v924_v61  ;;  %vm778_vm14 = vcmp.eq.f32.partialorder %v1991_v6, inf  ;;  %vm780_vm15 = vcmp.eq.f32.partialorder %v1991_v6, 0.0 }
 0x2ae   : > { %1336 = vrsqrt.f32 %v719_v5  ;;  %vm754_vm6 = vcmp.eq.f32.partialorder %v719_v5, inf  ;;  %v757_v31 = vand.u32 2147483648, %v719_v5  ;;  %vm756_vm7 = vcmp.eq.f32.partialorder %v719_v5, 0.0 }
 0x2af   : > { %1338 = vrsqrt.f32 %v1991_v6 }
 0x2b4   : > { %v1337_v9 = vpop.eup %1336 }
 0x2b5   : > { %v748_v10 = vmul.f32 %v1337_v9, %v719_v5  ;;  %v716_v11 = vpop.xlane.xlu1 %715  ;;  %v722_v12 = vpop.xlane.xlu0 %721 }
 0x2b6   : > { %1340 = vrsqrt.f32 %v716_v11  ;;  %v1339_v13 = vpop.eup %1338  ;;  %vm742_vm9 = vcmp.eq.f32.partialorder %v716_v11, inf  ;;  %vm744_vm10 = vcmp.eq.f32.partialorder %v716_v11, 0.0  ;;  %v745_v49 = vand.u32 2147483648, %v716_v11 }
 0x2b7   : > { %v749_v15 = vmul.f32 %v1337_v9, %v748_v10  ;;  %1342 = vrsqrt.f32 %v722_v12  ;;  %v772_v17 = vmul.f32 %v1339_v13, %v1991_v6  ;;  %vm766_vm11 = vcmp.eq.f32.partialorder %v722_v12, inf }
 0x2b8   : > { %vm768_vm12 = vcmp.eq.f32.partialorder %v722_v12, 0.0  ;;  %v769_v53 = vand.u32 2147483648, %v722_v12  ;;  %v781_v10 = vand.u32 2147483648, %v1991_v6 }
 0x2b9   : > { %v750_v16 = vmul.f32 0.5, %v749_v15  ;;  %v773_v26 = vmul.f32 %v1339_v13, %v772_v17 }
 0x2bb   : > { %v751_v18 = vsub.f32 1.5, %v750_v16  ;;  %v774_v39 = vmul.f32 0.5, %v773_v26 }
 0x2bc   : > { %v1341_v20 = vpop.eup %1340 }
 0x2bd   : > { %v1343_v22 = vpop.eup %1342  ;;  %v752_v23 = vmul.f32 %v1337_v9, %v751_v18  ;;  %v736_v24 = vmul.f32 %v1341_v20, %v716_v11  ;;  %v775_v46 = vsub.f32 1.5, %v774_v39 }
 0x2be   : > { %v760_v25 = vmul.f32 %v1343_v22, %v722_v12 }
 0x2bf   : > { %v753_v27 = vmul.f32 %v752_v23, %v719_v5  ;;  %v737_v28 = vmul.f32 %v1341_v20, %v736_v24  ;;  %v776_v57 = vmul.f32 %v1339_v13, %v775_v46  ;;  %v973_v24 = vld [vmem:[#allocation13 + $0x18] sm:$0xff] }
 0x2c0   : > { %v761_v32 = vmul.f32 %v1343_v22, %v760_v25  ;;  %v972_v25 = vld [vmem:[#allocation13 + $0x10] sm:$0xff]  ;;  %993 = vmatpush.msrb.mxu2 %v973_v24 }
 0x2c1   : > { %v755_v33 = vsel %vm754_vm6, %v719_v5, %v753_v27  ;;  %v738_v34 = vmul.f32 0.5, %v737_v28  ;;  %v777_v62 = vmul.f32 %v776_v57, %v1991_v6 }
 0x2c2   : > { %v758_v37 = vsel %vm756_vm7, %v757_v31, %v755_v33  ;;  %v762_v38 = vmul.f32 0.5, %v761_v32  ;;  %v971_v31 = vld [vmem:[#allocation13 + $0x8] sm:$0xff]  ;;  %994 = vmatpush.msrb.mxu2 %v972_v25  ;;  %vm937_vm7 = vweird.f32 %v2007_v1 }
 0x2c3   : > { %1344 = vrsqrt.f32 %v758_v37  ;;  %v739_v40 = vsub.f32 1.5, %v738_v34  ;;  %v779_v7 = vsel %vm778_vm14, %v1991_v6, %v777_v62  ;;  %vm802_vm1 = vcmp.eq.f32.partialorder %v758_v37, inf }
 0x2c4   : > { %v763_v43 = vsub.f32 1.5, %v762_v38  ;;  %v2015_v13 = vsel %vm780_vm15, %v781_v10, %v779_v7  ;;  %v805_v14 = vand.u32 2147483648, %v758_v37  ;;  %vm804_vm2 = vcmp.eq.f32.partialorder %v758_v37, 0.0  ;;  %995 = vmatpush.msrb.mxu2 %v971_v31 }
 0x2c5   : > { %v740_v44 = vmul.f32 %v1341_v20, %v739_v40 }
 0x2c6   : > { %v764_v45 = vmul.f32 %v1343_v22, %v763_v43 }
 0x2c7   : > { %v741_v47 = vmul.f32 %v740_v44, %v716_v11 }
 0x2c8   : > { %v765_v50 = vmul.f32 %v764_v45, %v722_v12 }
 0x2c9   : > { %v1345_v51 = vpop.eup %1344  ;;  %v743_v52 = vsel %vm742_vm9, %v716_v11, %v741_v47  ;;  %vm824_vm9 = vweird.f32 %v2015_v13 }
 0x2ca   : > { %v1998_v54 = vsel %vm744_vm10, %v745_v49, %v743_v52  ;;  %v767_v55 = vsel %vm766_vm11, %v722_v12, %v765_v50  ;;  %v796_v56 = vmul.f32 %v1345_v51, %v758_v37  ;;  %v941_v52 = vand.u32 2147483647, %v2007_v1 }
 0x2cb   : > { %1346 = vrsqrt.f32 %v1998_v54  ;;  %v770_v58 = vsel %vm768_vm12, %v769_v53, %v767_v55  ;;  %vm790_vm3 = vcmp.eq.f32.partialorder %v1998_v54, inf  ;;  %v793_v30 = vand.u32 2147483648, %v1998_v54 }
 0x2cc   : > { %1348 = vrsqrt.f32 %v770_v58  ;;  %v797_v60 = vmul.f32 %v1345_v51, %v796_v56  ;;  %vm814_vm4 = vcmp.eq.f32.partialorder %v770_v58, inf  ;;  %v817_v33 = vand.u32 2147483648, %v770_v58 }
 0x2cd   : > { %1350 = vrcp.f32 %v2007_v1  ;;  %vm792_vm5 = vcmp.eq.f32.partialorder %v1998_v54, 0.0  ;;  %vm816_vm6 = vcmp.eq.f32.partialorder %v770_v58, 0.0  ;;  %v943_v55 = vand.u32 2147483648, %v2007_v1 }
 0x2ce   : > { %v798_v63 = vmul.f32 0.5, %v797_v60  ;;  %1352 = vrcp.f32 %v2015_v13 }
 0x2d0   : > { %v799_v3 = vsub.f32 1.5, %v798_v63 }
 0x2d1   : > { %v1347_v2 = vpop.eup %1346 }
 0x2d2   : > { %v1349_v4 = vpop.eup %1348  ;;  %v784_v5 = vmul.f32 %v1347_v2, %v1998_v54  ;;  %v800_v9 = vmul.f32 %v1345_v51, %v799_v3 }
 0x2d3   : > { %v808_v8 = vmul.f32 %v1349_v4, %v770_v58  ;;  %v2020_v20 = vpop.eup %1350 }
 0x2d4   : > { %v785_v0 = vmul.f32 %v1347_v2, %v784_v5  ;;  %v801_v12 = vmul.f32 %v800_v9, %v758_v37  ;;  %v933_v27 = vmul.f32 %v2020_v20, %v2007_v1  ;;  %v2028_v32 = vpop.eup %1352  ;;  %vm938_vm8 = vweird.f32 %v2020_v20  ;;  %v1328_v1 = vld [vmem:[%s2141_s8] ss:$0 sm:$0xff] }
 0x2d5   : > { %v809_v11 = vmul.f32 %v1349_v4, %v808_v8  ;;  %v820_v44 = vmul.f32 %v2028_v32, %v2015_v13  ;;  %vm825_vm10 = vweird.f32 %v2028_v32 }
 0x2d6   : > { %v786_v15 = vmul.f32 0.5, %v785_v0  ;;  %v803_v17 = vsel %vm802_vm1, %v758_v37, %v801_v12  ;;  %v934_v43 = vsub.f32 1.0, %v933_v27 }
 0x2d7   : > { %v810_v16 = vmul.f32 0.5, %v809_v11  ;;  %v2017_v18 = vsel %vm804_vm2, %v805_v14, %v803_v17  ;;  %v821_v47 = vsub.f32 1.0, %v820_v44 }
 0x2d8   : > { %v787_v19 = vsub.f32 1.5, %v786_v15  ;;  %1354 = vrcp.f32 %v2017_v18  ;;  %v935_v46 = vmul.f32 %v2020_v20, %v934_v43  ;;  %vm854_vm11 = vweird.f32 %v2017_v18 }
 0x2d9   : > { %v811_v22 = vsub.f32 1.5, %v810_v16  ;;  %v822_v57 = vmul.f32 %v2028_v32, %v821_v47  ;;  %v860_v61 = vand.u32 2147483648, %v2017_v18  ;;  %v858_v3 = vand.u32 2147483647, %v2017_v18 }
 0x2da   : > { %v788_v6 = vmul.f32 %v1347_v2, %v787_v19  ;;  %v828_v15 = vand.u32 2147483647, %v2015_v13  ;;  %v830_v16 = vand.u32 2147483648, %v2015_v13 }
 0x2db   : > { %v812_v23 = vmul.f32 %v1349_v4, %v811_v22  ;;  %v823_v8 = vadd.f32 %v2028_v32, %v822_v57  ;;  %v861_v14 = vor.u32 1.1754944e-38, %v860_v61 }
 0x2dc   : > { %v789_v26 = vmul.f32 %v788_v6, %v1998_v54 }
 0x2dd   : > { %v813_v28 = vmul.f32 %v812_v23, %v770_v58 }
 0x2de   : > { %v791_v34 = vsel %vm790_vm3, %v1998_v54, %v789_v26  ;;  %v2032_v37 = vpop.eup %1354  ;;  %v936_v54 = vadd.f32 %v2020_v20, %v935_v46  ;;  %v944_v26 = vor.u32 1.1754944e-38, %v943_v55 }
 0x2df   : > { %v815_v38 = vsel %vm814_vm4, %v770_v58, %v813_v28  ;;  %v794_v39 = vsel %vm792_vm5, %v793_v30, %v791_v34  ;;  %v850_v41 = vmul.f32 %v2032_v37, %v2017_v18  ;;  %vm855_vm12 = vweird.f32 %v2032_v37 }
 0x2e0   : > { %v818_v40 = vsel %vm816_vm6, %v817_v33, %v815_v38  ;;  %1356 = vrcp.f32 %v794_v39  ;;  %vm2053_vm15 = vmor %vm854_vm11, %vm855_vm12  ;;  %vm839_vm1 = vweird.f32 %v794_v39  ;;  %v845_v7 = vand.u32 2147483648, %v794_v39 }
 0x2e1   : > { %1358 = vrcp.f32 %v818_v40  ;;  %v851_v45 = vsub.f32 1.0, %v850_v41  ;;  %v875_v60 = vand.u32 2147483648, %v818_v40  ;;  %v873_v2 = vand.u32 2147483647, %v818_v40  ;;  %vm2073_vm11 = vmor %vm937_vm7, %vm938_vm8 }
 0x2e2   : > { %vm869_vm2 = vweird.f32 %v818_v40  ;;  %v843_v11 = vand.u32 2147483647, %v794_v39  ;;  %vm859_vm6 = vcmp.eq.f32.partialorder %v858_v3, 8.507059e+37  ;;  %v846_v23 = vor.u32 1.1754944e-38, %v845_v7  ;;  %vm826_vm12 = vmor %vm824_vm9, %vm825_vm10 }
 0x2e3   : > { %v852_v49 = vmul.f32 %v2032_v37, %v851_v45  ;;  %v876_v12 = vor.u32 1.1754944e-38, %v875_v60  ;;  %vm874_vm5 = vcmp.eq.f32.partialorder %v873_v2, 8.507059e+37  ;;  %v827_v25 = vsel %vm826_vm12, %v2028_v32, %v823_v8 }
 0x2e4   : > { %v831_v28 = vor.u32 1.1754944e-38, %v830_v16  ;;  %v940_v30 = vsel %vm2073_vm11, %v2020_v20, %v936_v54  ;;  %vm942_vm7 = vcmp.eq.f32.partialorder %v941_v52, 8.507059e+37  ;;  %vm829_vm8 = vcmp.eq.f32.partialorder %v828_v15, 8.507059e+37  ;;  %v970_v20 = vld [vmem:[#allocation13] sm:$0xff] }
 0x2e5   : > { %v853_v59 = vadd.f32 %v2032_v37, %v852_v49  ;;  %v945_v32 = vsel %vm942_vm7, %v944_v26, %v940_v30  ;;  %v931_v33 = vmul.f32 %v1328_v1, %v1963_v21  ;;  %996 = vmatpush.msrb.mxu2 %v970_v20  ;;  %v1329_v21 = vld [vmem:[%s2190_s7] ss:$0 sm:$0xff] }
 0x2e6   : > { %v1357_v48 = vpop.eup %1356 }
 0x2e7   : > { %v1359_v50 = vpop.eup %1358  ;;  %v835_v51 = vmul.f32 %v1357_v48, %v794_v39  ;;  %vm840_vm13 = vweird.f32 %v1357_v48  ;;  %v857_v10 = vsel %vm2053_vm15, %v2032_v37, %v853_v59  ;;  %v946_v37 = vmul.f32 %v945_v32, %v931_v33 }
 0x2e8   : > { %v865_v53 = vmul.f32 %v1359_v50, %v818_v40  ;;  %vm870_vm14 = vweird.f32 %v1359_v50  ;;  %vm2061_vm3 = vmor %vm839_vm1, %vm840_vm13  ;;  %v862_v6 = vsel %vm859_vm6, %v861_v14, %v857_v10  ;;  %vm844_vm13 = vcmp.eq.f32.partialorder %v843_v11, 8.507059e+37 }
 0x2e9   : > { %v836_v56 = vsub.f32 1.0, %v835_v51  ;;  %vm871_vm4 = vmor %vm869_vm2, %vm870_vm14  ;;  %v863_v13 = vmul.f32 %v862_v6, %v1973_v35 }
 0x2ea   : > { %v866_v58 = vsub.f32 1.0, %v865_v53 }
 0x2eb   : > { %v837_v62 = vmul.f32 %v1357_v48, %v836_v56 }
 0x2ec   : > { %v867_v63 = vmul.f32 %v1359_v50, %v866_v58 }
 0x2ed   : > { %v838_v5 = vadd.f32 %v1357_v48, %v837_v62 }
 0x2ee   : > { %v868_v9 = vadd.f32 %v1359_v50, %v867_v63 }
 0x2ef   : > { %v842_v18 = vsel %vm2061_vm3, %v1357_v48, %v838_v5 }
 0x2f0   : > { %v872_v17 = vsel %vm871_vm4, %v1359_v50, %v868_v9  ;;  %v847_v27 = vsel %vm844_vm13, %v846_v23, %v842_v18 }
 0x2f1   : > { %v877_v22 = vsel %vm874_vm5, %v876_v12, %v872_v17  ;;  %v848_v31 = vmul.f32 %v847_v27, %v1975_v36 }
 0x2f2   : > { %v878_v24 = vmul.f32 %v877_v22, %v1982_v42  ;;  %v832_v42 = vsel %vm829_vm8, %v831_v28, %v827_v25 }
 0x2f3   : > { %v833_v34 = vmul.f32 %v832_v42, %v1968_v29 }
 0x2f4   : > { %962 = vmatpush.msrb.mxu1 %v878_v24 }
 0x2f6   : > { %963 = vmatpush.msrb.mxu1 %v863_v13 }
 0x2f8   : > { %964 = vmatpush.msrb.mxu1 %v848_v31 }
 0x2fa   : > { %965 = vmatpush.msrb.mxu1 %v833_v34 }
 0x2fb   : > { %1211 = vmatmul.msk.f32.vlgmr.msrb.gmra.mxu1 %vm542_vm0, %v946_v37 }
 0x378   : > { %v967_v35 = vpop.f32.mrf.mxu1 }
 0x379   : > { %1212 = vmatmul.msk.f32.vlgmr.msrb.gmra.mxu2 %vm542_vm0, %v967_v35 }
 0x3fc   : > { %v998_v29 = vpop.f32.mrf.mxu2 }
 0x3fd   : > { %v999_v36 = vadd.f32 %v1329_v21, %v998_v29 }
 0x3ff   : > { %1001 = vst.msk [vmem:[%s534_s30] sm:$0xff] %vm542_vm0, %v999_v36 }
 0x400   : > { %1627 = shalt.err (!%p1624_p3)
}
 0x401   : > { %1244 = dma.vmem_to_hbm [thread:$0]  (%p1825_p4), %s1016_s3, 128, %s1018_s12, %s1003_s11  }
 0x402 PF: > { %s2191_s28 = sld [smem:[#allocation23_spill]] }
 0x403   : > { %s2193_s23 = sld [smem:[#allocation24_spill]] }
 0x408   : > { %s1029_s5 = sand.u32 1, %s2191_s28  }
 0x409   : > { %p2194_p7 = scmp.ge.s32.totalorder %s2193_s23, 2  ;;  %s1030_s17 = scalar_lea.sflag [#allocation4], %s1029_s5 }
 0x40b   : > { %p1273_p9 = pnand %p2194_p7, %p1829_p5 }
 0x40d   : > { %p1274_p0 = pneg %p1273_p9 }
 0x40f   : > { %1665 = dma.done.wait (%p1274_p0), %s1030_s17, 128  }
 0x410   : > { %1667 = vsyncadd (%p1274_p0), %s1030_s17, 4294967168  ;;  %s2195_s16 = sld [smem:[#allocation25_spill]]  ;;  %s2197_s13 = smov %s1674_s14 }
 0x411   : > { %s2196_s26 = sld [smem:[#allocation26_spill]]  ;;  %s2198_s14 = smov %s1678_s15 }
 0x416   : > { %p29_p2 = scmp.ge.s32.totalorder %s2195_s16, 4  }
 0x417   : > { %s2199_s15 = smov %s2196_s26 }
 0x418   :  { %31 = sbr.rel (!%p29_p2) target bundleno = 16 (0x10), region = 149 }
 0x41d   :  { %1036 = vsyncpa [#allocation3], 1 }
 0x41e   :  { %1038 = vsyncpa [#allocation3 + $0x1], 1 }
 0x41f   :  { %1039 = vsyncpa [#allocation6], 1 }
 0x420   :  { %1041 = vsyncpa [#allocation6 + $0x1], 1 }
 0x421   :  { %1042 = vsyncpa [#allocation9], 1 }
 0x422   :  { %1043 = vsyncpa [#allocation12], 1 }
 0x423   :  { %1044 = vsyncpa [#allocation15], 1 }
 0x424   :  { %1045 = vsyncpa [#allocation4], 1 }
 0x425   :  { %1047 = vsyncpa [#allocation4 + $0x1], 1 }

</bundles_post_ra>
